<compile_context>
chip_gen: v7x
topology: tpu7x:2x2x1
jax: 0.10.0
libtpu: 0.0.40
codegen_flags: <defaults>
</compile_context>

<pallas_src>
import functools

import jax
import jax.numpy as jnp
from jax.experimental import pallas as pl
from jax.experimental.pallas import tpu as pltpu

LATENT_DIM = 16
HIDDEN = 200
HIDDEN_PAD = 256            # 2 x 128 lanes: unmasked vector ops / clean MXU tiles
OUT_COLS = 64               # packed output slab: [z | mean | log_var | y | pad]
MAX_TILE_B = 2048           # upper bound on rows per grid step (v5e/v6e like big tiles)
VMEM_TILE_BUDGET = 32 << 20 # double-buffered tile budget; fits v7x's 64 MiB/TC VMEM


def _round_up(x, m):
    return (x + m - 1) // m * m


def _bf16_tanh_ok():
    """bf16 tanh only on generations with a bf16-capable EUP (v6e / v7x)."""
    try:
        kind = jax.devices()[0].device_kind.lower()
    except Exception:
        return False
    return any(tag in kind for tag in ("v6", "v7", "7x"))


def _choose_tile_b(B, d_in):
    """Rows per grid step: big enough to amortize per-step overhead, small
    enough to (a) keep the double-buffered tiles within the VMEM budget and
    (b) leave >= 2 grid steps so ("parallel",) shards across v7x's 2 TCs."""
    if B < 16:
        return B                                    # one full-array block
    d_in_pad = _round_up(d_in, 128)
    # per-row VMEM bytes, double-buffered: x (bf16) + eps + out (f32, lane-padded to 128)
    per_row = 2 * (2 * d_in_pad + 4 * 128 + 4 * 128)
    t = max(8, VMEM_TILE_BUDGET // per_row)
    t = min(t, MAX_TILE_B)
    t = (t // 8) * 8                                # multiple of 8 sublanes
    t = min(t, _round_up(pl.cdiv(B, 2), 8))         # guarantee >= 2 grid steps
    return max(t, 8)


def _vmem_limit_bytes(tile_b, d_in, latent):
    """Derive the VMEM limit from the actual lane-padded, double-buffered footprint."""
    d_in_pad = _round_up(d_in, 128)
    tiles = 2 * tile_b * (2 * d_in_pad + 4 * 128 + 4 * 128)        # x + eps + out, x2 buffers
    weights = (2 * d_in_pad * _round_up(2 * latent, 128) * 2       # w_enc (bf16)
               + 2 * _round_up(latent, 16) * HIDDEN_PAD * 2        # w1 (bf16)
               + 8 * (8 * 128) * 4)                                # biases / rows (padded)
    limit = tiles + weights + (4 << 20)                            # slack for compiler scratch
    return int(min(max(limit, 16 << 20), 64 << 20))


def _rve_kernel(x_ref, eps_ref,
                we_ref, be_ref,                    # encoder Linear(d_in -> 2*latent)
                w1_ref, b1_ref,                    # regressor Linear(latent -> HIDDEN_PAD)
                w2_ref, b2_ref,                    # regressor Linear(HIDDEN_PAD -> 1), row layout
                out_ref, *, latent, tanh_bf16):
    # --- encoder: ONE MXU dot, f32 accumulation; h = [mean | log_var] -------
    h = jnp.dot(x_ref[...], we_ref[...],
                preferred_element_type=jnp.float32) + be_ref[...]
    mean = h[:, :latent]
    log_var = h[:, latent:]

    # --- reparameterization: z = mean + exp(0.5*log_var) * eps  (f32, EUP) --
    z = mean + jnp.exp(0.5 * log_var) * eps_ref[...]

    # --- regressor: Linear -> Tanh (MXU + EUP) -------------------------------
    pre = jnp.dot(z.astype(w1_ref.dtype), w1_ref[...],
                  preferred_element_type=jnp.float32) + b1_ref[...]
    a = jnp.tanh(pre.astype(jnp.bfloat16)) if tanh_bf16 else jnp.tanh(pre)
    # Final N=1 matmul as VPU multiply + lane reduction (w2 passed as a row).
    y = jnp.sum(a.astype(jnp.float32) * w2_ref[...], axis=-1,
                keepdims=True) + b2_ref[...]

    # --- pack [z | mean | log_var | y] into one lane-dense slab --------------
    # Lanes [3*latent+1, OUT_COLS) are intentionally left unwritten: they are
    # never read (the wrapper slices them off).
    out_ref[:, 0:latent] = z
    out_ref[:, latent:3 * latent] = h              # h is already [mean | log_var]
    out_ref[:, 3 * latent:3 * latent + 1] = y


def _prepare_params(params_raw):
    """bf16 matmul weights, pad hidden 200 -> 256, final weight as a row."""
    w_enc, b_enc, w1, b1, w2, b2 = params_raw
    latent = w_enc.shape[1] // 2
    hidden = w1.shape[1]

    w_enc_b = w_enc.astype(jnp.bfloat16)
    b_enc_f = b_enc.reshape(1, -1).astype(jnp.float32)
    w1p = jnp.zeros((latent, HIDDEN_PAD), jnp.bfloat16).at[:, :hidden].set(
        w1.astype(jnp.bfloat16))
    b1p = jnp.zeros((1, HIDDEN_PAD), jnp.float32).at[:, :hidden].set(
        b1.reshape(1, -1).astype(jnp.float32))
    w2row = jnp.zeros((1, HIDDEN_PAD), jnp.float32).at[:, :hidden].set(
        w2.reshape(1, -1).astype(jnp.float32))
    b2r = b2.reshape(1, 1).astype(jnp.float32)
    return w_enc_b, b_enc_f, w1p, b1p, w2row, b2r


def rve_forward(x, eps, params_raw, tanh_bf16=None):
    """Fused RVE forward.  x: (B, seq, feat), eps: (B, latent).

    Returns (y_hat, z, mean, log_var) — matches PyTorch forward, decode_mode=False.
    """
    B = x.shape[0]
    x_flat = x.reshape(B, -1)
    d_in = x_flat.shape[1]
    latent = eps.shape[1]
    assert 3 * latent + 1 <= OUT_COLS, "latent too large for the packed output slab"

    if tanh_bf16 is None:
        tanh_bf16 = _bf16_tanh_ok()

    w_enc_b, b_enc_f, w1p, b1p, w2row, b2r = _prepare_params(params_raw)

    x_bf16 = x_flat.astype(jnp.bfloat16)
    eps_f32 = eps.astype(jnp.float32)

    tile_b = _choose_tile_b(B, d_in)
    grid = (pl.cdiv(B, tile_b),)      # no host-side padding; last block may be partial

    def batch_spec(cols):
        return pl.BlockSpec((tile_b, cols), lambda i: (i, 0))

    def const_spec(shape):
        return pl.BlockSpec(shape, lambda i: (0, 0))

    cost = pl.CostEstimate(
        flops=int(2 * B * d_in * 2 * latent          # encoder dot
                  + 2 * B * latent * HIDDEN_PAD      # regressor dot
                  + B * (3 * HIDDEN_PAD + 6 * latent)),
        transcendentals=int(B * (latent + HIDDEN_PAD)),
        bytes_accessed=int(x_bf16.size * 2 + eps_f32.size * 4
                           + B * OUT_COLS * 4
                           + (w_enc_b.size + w1p.size) * 2
                           + (b_enc_f.size + b1p.size + w2row.size + b2r.size) * 4),
    )

    kernel = functools.partial(_rve_kernel, latent=latent, tanh_bf16=bool(tanh_bf16))

    out = pl.pallas_call(
        kernel,
        out_shape=jax.ShapeDtypeStruct((B, OUT_COLS), jnp.float32),
        grid=grid,
        in_specs=[
            batch_spec(d_in),                      # x
            batch_spec(latent),                    # eps
            const_spec((d_in, 2 * latent)),        # w_enc (bf16)
            const_spec((1, 2 * latent)),           # b_enc
            const_spec((latent, HIDDEN_PAD)),      # w1 (padded, bf16)
            const_spec((1, HIDDEN_PAD)),           # b1 (padded)
            const_spec((1, HIDDEN_PAD)),           # w2 row (padded)
            const_spec((1, 1)),                    # b2
        ],
        out_specs=batch_spec(OUT_COLS),
        compiler_params=pltpu.CompilerParams(
            dimension_semantics=("parallel",),
            vmem_limit_bytes=_vmem_limit_bytes(tile_b, d_in, latent),
        ),
        cost_estimate=cost,
    )(x_bf16, eps_f32, w_enc_b, b_enc_f, w1p, b1p, w2row, b2r)

    z = out[:, 0:latent]
    mean = out[:, latent:2 * latent]
    log_var = out[:, 2 * latent:3 * latent]
    y_hat = out[:, 3 * latent:3 * latent + 1]
    return y_hat, z, mean, log_var


def init_params(key, d_in, latent, hidden):
    """Deterministic parameter init (shapes follow the module's __init__)."""
    k = jax.random.split(key, 6)
    scale = 0.1
    w_enc = scale * jax.random.normal(k[0], (d_in, 2 * latent), jnp.float32)
    b_enc = scale * jax.random.normal(k[1], (1, 2 * latent), jnp.float32)
    w1 = scale * jax.random.normal(k[2], (latent, hidden), jnp.float32)
    b1 = scale * jax.random.normal(k[3], (1, hidden), jnp.float32)
    w2 = scale * jax.random.normal(k[4], (hidden, 1), jnp.float32)
    b2 = scale * jax.random.normal(k[5], (1, 1), jnp.float32)
    return (w_enc, b_enc, w1, b1, w2, b2)


def rve_reference(x, eps, params_raw, tanh_bf16=False):
    """Pure-JAX reference with the same precision choices (bf16 operands, f32 acc)."""
    w_enc, b_enc, w1, b1, w2, b2 = params_raw
    B = x.shape[0]
    latent = w_enc.shape[1] // 2
    xf = x.reshape(B, -1).astype(jnp.bfloat16)
    h = jnp.dot(xf, w_enc.astype(jnp.bfloat16),
                preferred_element_type=jnp.float32) + b_enc.reshape(1, -1)
    mean, log_var = h[:, :latent], h[:, latent:]
    z = mean + jnp.exp(0.5 * log_var) * eps.astype(jnp.float32)
    pre = jnp.dot(z.astype(jnp.bfloat16), w1.astype(jnp.bfloat16),
                  preferred_element_type=jnp.float32) + b1.reshape(1, -1)
    a = jnp.tanh(pre.astype(jnp.bfloat16)) if tanh_bf16 else jnp.tanh(pre)
    y = jnp.sum(a.astype(jnp.float32) * w2.reshape(1, -1), axis=-1,
                keepdims=True) + b2.reshape(1, 1)
    return y, z, mean, log_var


if __name__ == "__main__":
    SEQ, FEAT = 8, 4
    D_IN = SEQ * FEAT

    key = jax.random.PRNGKey(0)
    kp, kx1, ke1, kx2, ke2 = jax.random.split(key, 5)
    params = init_params(kp, D_IN, LATENT_DIM, HIDDEN)
    tanh_bf16 = _bf16_tanh_ok()

    cases = [
        # tiny batch: grid = 1, single full-array block
        (jax.random.normal(kx1, (2, SEQ, FEAT), jnp.float32),
         jax.random.normal(ke1, (2, LATENT_DIM), jnp.float32)),
        # batch not divisible by the tile: grid = 2 ("parallel" -> both v7x TCs),
        # partial (masked) last block, no host-side padding of x/eps
        (jax.random.normal(kx2, (40, SEQ, FEAT), jnp.float32),
         jax.random.normal(ke2, (40, LATENT_DIM), jnp.float32)),
    ]

    for x, eps in cases:
        B = x.shape[0]
        y_hat, z, mean, log_var = jax.block_until_ready(
            rve_forward(x, eps, params, tanh_bf16=tanh_bf16))
        y_r, z_r, m_r, lv_r = rve_reference(x, eps, params, tanh_bf16=tanh_bf16)

        assert y_hat.shape == (B, 1) and z.shape == (B, LATENT_DIM)
        assert mean.shape == (B, LATENT_DIM) and log_var.shape == (B, LATENT_DIM)
        assert jnp.allclose(y_hat, y_r, atol=1e-3, rtol=1e-3), "y_hat mismatch"
        assert jnp.allclose(z, z_r, atol=1e-3, rtol=1e-3), "z mismatch"
        assert jnp.allclose(mean, m_r, atol=1e-3, rtol=1e-3), "mean mismatch"
        assert jnp.allclose(log_var, lv_r, atol=1e-3, rtol=1e-3), "log_var mismatch"

    print("KERNEL_OK")
</pallas_src>

<mosaic_0001>
module attributes {stable_mosaic.version = 11 : i64} {
  func.func @_rve_kernel(%arg0: i32, %arg1: memref<2x32xbf16, #tpu.memory_space<vmem>>, %arg2: memref<2x16xf32, #tpu.memory_space<vmem>>, %arg3: memref<32x32xbf16, #tpu.memory_space<vmem>>, %arg4: memref<1x32xf32, #tpu.memory_space<vmem>>, %arg5: memref<16x256xbf16, #tpu.memory_space<vmem>>, %arg6: memref<1x256xf32, #tpu.memory_space<vmem>>, %arg7: memref<1x256xf32, #tpu.memory_space<vmem>>, %arg8: memref<1x1xf32, #tpu.memory_space<vmem>>, %arg9: memref<2x64xf32, #tpu.memory_space<vmem>>) attributes {dimension_semantics = [#tpu.dimension_semantics<parallel>], iteration_bounds = array<i64: 1>, scalar_prefetch = 0 : i64, scratch_operands = 0 : i64, tpu.core_type = #tpu.core_type<tc>, window_params = [{transform_indices = @transform_0, window_bounds = array<i64: 2, 32>}, {transform_indices = @transform_1, window_bounds = array<i64: 2, 16>}, {pipeline_mode = #tpu.pipeline_mode<synchronous>, transform_indices = @transform_2, window_bounds = array<i64: 32, 32>}, {pipeline_mode = #tpu.pipeline_mode<synchronous>, transform_indices = @transform_3, window_bounds = array<i64: 1, 32>}, {pipeline_mode = #tpu.pipeline_mode<synchronous>, transform_indices = @transform_4, window_bounds = array<i64: 16, 256>}, {pipeline_mode = #tpu.pipeline_mode<synchronous>, transform_indices = @transform_5, window_bounds = array<i64: 1, 256>}, {pipeline_mode = #tpu.pipeline_mode<synchronous>, transform_indices = @transform_6, window_bounds = array<i64: 1, 256>}, {pipeline_mode = #tpu.pipeline_mode<synchronous>, transform_indices = @transform_7, window_bounds = array<i64: 1, 1>}, {transform_indices = @transform_8, window_bounds = array<i64: 2, 64>}]} {
    %c0 = arith.constant 0 : index
    %c0_0 = arith.constant 0 : index
    %0 = vector.load %arg1[%c0, %c0_0] : memref<2x32xbf16, #tpu.memory_space<vmem>>, vector<2x32xbf16>
    %c0_1 = arith.constant 0 : index
    %c0_2 = arith.constant 0 : index
    %1 = vector.load %arg3[%c0_1, %c0_2] : memref<32x32xbf16, #tpu.memory_space<vmem>>, vector<32x32xbf16>
    %cst = arith.constant dense<0.000000e+00> : vector<2x32xf32>
    %2 = tpu.matmul %0, %1, %cst {dimension_numbers = #tpu.dot_dimension_numbers<[1], [0], [0], [1], [0, 0, 1, 1], [], []>} : vector<2x32xbf16>, vector<32x32xbf16>, vector<2x32xf32> -> vector<2x32xf32>
    %c0_3 = arith.constant 0 : index
    %c0_4 = arith.constant 0 : index
    %3 = vector.load %arg4[%c0_3, %c0_4] : memref<1x32xf32, #tpu.memory_space<vmem>>, vector<1x32xf32>
    %4 = vector.broadcast %3 : vector<1x32xf32> to vector<2x32xf32>
    %5 = arith.addf %2, %4 : vector<2x32xf32>
    %6 = vector.extract_strided_slice %5 {offsets = [0, 0], sizes = [2, 16], strides = [1, 1]} : vector<2x32xf32> to vector<2x16xf32>
    %7 = vector.extract_strided_slice %5 {offsets = [0, 16], sizes = [2, 16], strides = [1, 1]} : vector<2x32xf32> to vector<2x16xf32>
    %cst_5 = arith.constant 5.000000e-01 : f32
    %8 = vector.broadcast %cst_5 : f32 to vector<2x16xf32>
    %9 = arith.mulf %8, %7 : vector<2x16xf32>
    %10 = math.exp %9 : vector<2x16xf32>
    %c0_6 = arith.constant 0 : index
    %c0_7 = arith.constant 0 : index
    %11 = vector.load %arg2[%c0_6, %c0_7] : memref<2x16xf32, #tpu.memory_space<vmem>>, vector<2x16xf32>
    %12 = arith.mulf %10, %11 : vector<2x16xf32>
    %13 = arith.addf %6, %12 : vector<2x16xf32>
    %14 = arith.truncf %13 : vector<2x16xf32> to vector<2x16xbf16>
    %c0_8 = arith.constant 0 : index
    %c0_9 = arith.constant 0 : index
    %15 = vector.load %arg5[%c0_8, %c0_9] : memref<16x256xbf16, #tpu.memory_space<vmem>>, vector<16x256xbf16>
    %cst_10 = arith.constant dense<0.000000e+00> : vector<2x256xf32>
    %16 = tpu.matmul %14, %15, %cst_10 {dimension_numbers = #tpu.dot_dimension_numbers<[1], [0], [0], [1], [0, 0, 1, 1], [], []>} : vector<2x16xbf16>, vector<16x256xbf16>, vector<2x256xf32> -> vector<2x256xf32>
    %c0_11 = arith.constant 0 : index
    %c0_12 = arith.constant 0 : index
    %17 = vector.load %arg6[%c0_11, %c0_12] : memref<1x256xf32, #tpu.memory_space<vmem>>, vector<1x256xf32>
    %18 = vector.broadcast %17 : vector<1x256xf32> to vector<2x256xf32>
    %19 = arith.addf %16, %18 : vector<2x256xf32>
    %20 = math.tanh %19 : vector<2x256xf32>
    %c0_13 = arith.constant 0 : index
    %c0_14 = arith.constant 0 : index
    %21 = vector.load %arg7[%c0_13, %c0_14] : memref<1x256xf32, #tpu.memory_space<vmem>>, vector<1x256xf32>
    %22 = vector.broadcast %21 : vector<1x256xf32> to vector<2x256xf32>
    %23 = arith.mulf %20, %22 : vector<2x256xf32>
    %cst_15 = arith.constant dense<0.000000e+00> : vector<2xf32>
    %24 = vector.multi_reduction <add>, %23, %cst_15 [1] : vector<2x256xf32> to vector<2xf32>
    %25 = vector.shape_cast %24 : vector<2xf32> to vector<2x1xf32>
    %c0_16 = arith.constant 0 : index
    %c0_17 = arith.constant 0 : index
    %26 = vector.load %arg8[%c0_16, %c0_17] : memref<1x1xf32, #tpu.memory_space<vmem>>, vector<1x1xf32>
    %27 = vector.broadcast %26 : vector<1x1xf32> to vector<2x1xf32>
    %28 = arith.addf %25, %27 : vector<2x1xf32>
    %c0_18 = arith.constant 0 : index
    %c0_19 = arith.constant 0 : index
    %29 = vector.load %arg9[%c0_18, %c0_19] : memref<2x64xf32, #tpu.memory_space<vmem>>, vector<2x16xf32>
    tpu.vector_store %arg9[%c0_18, %c0_19], %13 {strides = array<i32>} : memref<2x64xf32, #tpu.memory_space<vmem>>, vector<2x16xf32>,
    %c0_20 = arith.constant 0 : index
    %c16 = arith.constant 16 : index
    %30 = vector.load %arg9[%c0_20, %c16] : memref<2x64xf32, #tpu.memory_space<vmem>>, vector<2x32xf32>
    tpu.vector_store %arg9[%c0_20, %c16], %5 {strides = array<i32>} : memref<2x64xf32, #tpu.memory_space<vmem>>, vector<2x32xf32>,
    %c0_21 = arith.constant 0 : index
    %c48 = arith.constant 48 : index
    %31 = vector.load %arg9[%c0_21, %c48] : memref<2x64xf32, #tpu.memory_space<vmem>>, vector<2x1xf32>
    tpu.vector_store %arg9[%c0_21, %c48], %28 {strides = array<i32>} : memref<2x64xf32, #tpu.memory_space<vmem>>, vector<2x1xf32>,
    return
  }
  func.func @transform_0(%arg0: i32) -> (i32, i32) {
    %c0_i32 = arith.constant 0 : i32
    %c0_i32_0 = arith.constant 0 : i32
    return %arg0, %c0_i32 : i32, i32
  }
  func.func @transform_1(%arg0: i32) -> (i32, i32) {
    %c0_i32 = arith.constant 0 : i32
    %c0_i32_0 = arith.constant 0 : i32
    return %arg0, %c0_i32 : i32, i32
  }
  func.func @transform_2(%arg0: i32) -> (i32, i32) {
    %c0_i32 = arith.constant 0 : i32
    %c0_i32_0 = arith.constant 0 : i32
    %c0_i32_1 = arith.constant 0 : i32
    return %c0_i32, %c0_i32_0 : i32, i32
  }
  func.func @transform_3(%arg0: i32) -> (i32, i32) {
    %c0_i32 = arith.constant 0 : i32
    %c0_i32_0 = arith.constant 0 : i32
    %c0_i32_1 = arith.constant 0 : i32
    return %c0_i32, %c0_i32_0 : i32, i32
  }
  func.func @transform_4(%arg0: i32) -> (i32, i32) {
    %c0_i32 = arith.constant 0 : i32
    %c0_i32_0 = arith.constant 0 : i32
    %c0_i32_1 = arith.constant 0 : i32
    return %c0_i32, %c0_i32_0 : i32, i32
  }
  func.func @transform_5(%arg0: i32) -> (i32, i32) {
    %c0_i32 = arith.constant 0 : i32
    %c0_i32_0 = arith.constant 0 : i32
    %c0_i32_1 = arith.constant 0 : i32
    return %c0_i32, %c0_i32_0 : i32, i32
  }
  func.func @transform_6(%arg0: i32) -> (i32, i32) {
    %c0_i32 = arith.constant 0 : i32
    %c0_i32_0 = arith.constant 0 : i32
    %c0_i32_1 = arith.constant 0 : i32
    return %c0_i32, %c0_i32_0 : i32, i32
  }
  func.func @transform_7(%arg0: i32) -> (i32, i32) {
    %c0_i32 = arith.constant 0 : i32
    %c0_i32_0 = arith.constant 0 : i32
    %c0_i32_1 = arith.constant 0 : i32
    return %c0_i32, %c0_i32_0 : i32, i32
  }
  func.func @transform_8(%arg0: i32) -> (i32, i32) {
    %c0_i32 = arith.constant 0 : i32
    %c0_i32_0 = arith.constant 0 : i32
    return %arg0, %c0_i32 : i32, i32
  }
}

</mosaic_0001>

<bundles_post_ra>
// kernel: tpu_custom_call.1
= control target key start
LH: loop header
LB: loop body
LE: loop exit
PB: predicated region body
PF: predicated region fallthrough
CT: control target
= control target key end

     0   :  { %s543_s0 = inlined_call_operand.hbm [shape: bf16[2,32], index: 0, kind: input, shape index: {}]   ;;  %s544_s1 = inlined_call_operand.vmem [shape: f32[2,16], index: 1, kind: input, shape index: {}]   ;;  %s545_s2 = inlined_call_operand.hbm [shape: bf16[32,32], index: 2, kind: input, shape index: {}]   ;;  %s546_s3 = inlined_call_operand.hbm [shape: f32[1,32], index: 3, kind: input, shape index: {}]   ;;  %s547_s4 = inlined_call_operand.vmem [shape: bf16[16,256], index: 4, kind: input, shape index: {}]   ;;  %s548_s5 = inlined_call_operand.vmem [shape: f32[1,256], index: 5, kind: input, shape index: {}]   ;;  %s549_s6 = inlined_call_operand.vmem [shape: f32[1,256], index: 6, kind: input, shape index: {}]   ;;  %s550_s7 = inlined_call_operand.<no memory space> [shape: f32[1,1], index: 7, kind: input, shape index: {}]   ;;  %s551_s8 = inlined_call_operand.hbm [shape: f32[2,64], index: 8, kind: output, shape index: {}]  }
   0x1   :  { %v13_v0 = vstv %s550_s7 }
   0x2   :  { %14 = vst [vmem:[#allocation2] sm:$0x1] %v13_v0 }
   0x3   :  { %15 = vsyncpa [#allocation4], 0 }
   0x4   :  { %16 = vsyncpa [#allocation7], 0 }
   0x5   :  { %17 = vsyncpa [#allocation5], 0  ;;  %s418_s29 = smov [#allocation6]   ;;  %s324_s11 = scalar_lea.hbm %s545_s2, 256 }
   0x6   :  { %s35_s30 = sshll.u32 %s418_s29, 4  ;;  %p325_p0 = scmp.ne.s32.totalorder %s545_s2, %s324_s11  ;;  %s36_s30 = int_to_ptr.vmem [resolvable:$true] %s35_s30 }
   0x7   :  { %p328_p1 = scmp.lt.u32.totalorder %s324_s11, %s545_s2 }
   0x9   :  { %p330_p2 = pnand %p328_p1, %p325_p0 }
   0xb   :  { %333 = shalt.err (!%p330_p2)
}
   0xc   :  { %s334_s7 = scalar_lea.vmem %s36_s30, 256  ;;  %p339_p4 = scmp.lt.s32.totalorder %s36_s30, %s36_s30 }
   0xd   :  { %p335_p3 = scmp.ne.s32.totalorder %s36_s30, %s334_s7  ;;  %p340_p5 = scmp.lt.s32.totalorder %s334_s7, %s334_s7 }
   0xf   :  { %p341_p6 = por %p340_p5, %p339_p4 }
  0x11   :  { %p342_p7 = pnand %p341_p6, %p335_p3 }
  0x13   :  { %345 = shalt.err (!%p342_p7)
}
  0x14   :  { %s419_s16 = smov 64   ;;  %s420_s17 = smov 4  }
  0x15   :  { %41 = dma.hbm_to_vmem [thread:$0]  %s545_s2, 256, %s36_s30, [#allocation7], %s419_s16, %s419_s16, %s420_s17  }
  0x16   :  { %s421_s20 = smov [#allocation3]   ;;  %s422_s22 = smov [#allocation8]  }
  0x17   :  { %s24_s21 = sshll.u32 %s421_s20, 4  ;;  %s48_s23 = sshll.u32 %s422_s22, 4  ;;  %s25_s21 = int_to_ptr.vmem [resolvable:$true] %s24_s21  ;;  %s49_s23 = int_to_ptr.vmem [resolvable:$true] %s48_s23 }
  0x18   :  { %s346_s26 = scalar_lea.hbm %s543_s0, 16 }
  0x19   :  { %p347_p8 = scmp.ne.s32.totalorder %s543_s0, %s346_s26  ;;  %p350_p9 = scmp.lt.u32.totalorder %s346_s26, %s543_s0 }
  0x1b   :  { %p352_p10 = pnand %p350_p9, %p347_p8 }
  0x1d   :  { %355 = shalt.err (!%p352_p10)
}
  0x1e   :  { %s356_s2 = scalar_lea.vmem %s25_s21, 16  ;;  %s360_s30 = scalar_lea.vmem %s25_s21, 32 }
  0x1f   :  { %p357_p11 = scmp.ne.s32.totalorder %s25_s21, %s356_s2  ;;  %p361_p12 = scmp.lt.s32.totalorder %s25_s21, %s25_s21 }
  0x20   :  { %p362_p13 = scmp.lt.s32.totalorder %s360_s30, %s356_s2 }
  0x22   :  { %p363_p0 = por %p362_p13, %p361_p12 }
  0x24   :  { %p364_p1 = pnand %p363_p0, %p357_p11 }
  0x26   :  { %367 = shalt.err (!%p364_p1)
}
  0x27   :  { %27 = dma.hbm_to_vmem [thread:$0]  %s543_s0, 16, %s25_s21, [#allocation4]  }
  0x28   :  { %s368_s14 = scalar_lea.hbm %s546_s3, 16 }
  0x29   :  { %p369_p2 = scmp.ne.s32.totalorder %s546_s3, %s368_s14  ;;  %p372_p3 = scmp.lt.u32.totalorder %s368_s14, %s546_s3 }
  0x2b   :  { %p374_p4 = pnand %p372_p3, %p369_p2 }
  0x2d   :  { %377 = shalt.err (!%p374_p4)
}
  0x2e   :  { %s378_s18 = scalar_lea.vmem %s49_s23, 16  ;;  %s382_s19 = scalar_lea.vmem %s49_s23, 32 }
  0x2f   :  { %p379_p5 = scmp.ne.s32.totalorder %s49_s23, %s378_s18  ;;  %p383_p6 = scmp.lt.s32.totalorder %s49_s23, %s49_s23 }
  0x30   :  { %p384_p7 = scmp.lt.s32.totalorder %s382_s19, %s378_s18 }
  0x32   :  { %p385_p8 = por %p384_p7, %p383_p6 }
  0x34   :  { %p386_p9 = pnand %p385_p8, %p379_p5 }
  0x36   :  { %389 = shalt.err (!%p386_p9)
}
  0x37   :  { %51 = dma.hbm_to_vmem [thread:$0]  %s546_s3, 16, %s49_s23, [#allocation7]  }
  0x38   :  { %412 = dma.done.wait [#allocation4], 16  }
  0x39   :  { %413 = vsyncadd [#allocation4], 4294967280 }
  0x3a   :  { %414 = dma.done.wait [#allocation7], 272  }
  0x3b   :  { %415 = vsyncadd [#allocation7], 4294967024  ;;  %v423_v1 = vmov 0.0   ;;  %vm424_vm0 = vmmov 0   ;;  %v313_v2 = vld [vmem:[#allocation6] sm:$0xff]   ;;  %v314_v3 = vld [vmem:[#allocation6 + $0x8] sm:$0xff]   ;;  %v157_v23 = vlaneseq }
  0x3c   :  { %293 = vmatprep.subr.bf16.mxu0 %v423_v1  ;;  %297 = vmatprep.mubr.msk.bf16.mxu0 %vm424_vm0, %v423_v1  ;;  %v141_v4 = vld [vmem:[%s544_s1] sm:$0x3]  ;;  %s425_s24 = smov 16   ;;  %vm94_vm1 = vcmask 261120   ;;  %v282_v6 = vld [vmem:[#allocation8] ss:$0 sm:$0xff] }
  0x3d   :  { %294 = vmatpush3.bf16.msra.mxu0 %v313_v2  ;;  %143 = vrot.lane.b32.xlu0 %v141_v4, %s425_s24  ;;  %v70_v5 = vld [vmem:[#allocation3] sm:$0x1]  ;;  %v315_v14 = vld [vmem:[%s547_s4 + $0x4] ss:$8 sps:$4 sm:$0xff]   ;;  %v426_v16 = vmov 0   ;;  %s427_s26 = smov 112  }
  0x3e   :  { %295 = vmatprep.subr.bf16.mxu0 %v423_v1  ;;  %v317_v15 = vld [vmem:[%s547_s4] ss:$8 sps:$4 sm:$0xff]   ;;  %181 = vmatprep.subr.bf16.mxu1 %v315_v14  ;;  %vm252_vm2 = vcmask 123904   ;;  %vm177_vm3 = vcmask 130048   ;;  %v158_v24 = vshrl.u32 %v157_v23, 7  ;;  %vm238_vm4 = vcmask 1041408  }
  0x3f   :  { %182 = vmatpush1.bf16.msra.mxu1 %v317_v15  ;;  %213 = vmatprep.mubr.bf16.mxu1 %v426_v16  ;;  %v155_v26 = vld [vmem:[%s548_s5] sm:$0x3]  ;;  %vm258_vm5 = vcmask 386176   ;;  %s428_s5 = smov 48   ;;  %vm264_vm6 = vcmask 394624  }
  0x40   :  { %v159_v25 = vsub.s32 0, %v158_v24  ;;  %v163_v27 = vsub.s32 1, %v158_v24  ;;  %v224_v36 = vld [vmem:[%s549_s6] sm:$0x3]  ;;  %s429_s6 = smov [#allocation9]  }
  0x41   :  { %296 = vmatpush3.bf16.msra.mxu0 %v314_v3  ;;  %v289_v46 = vld [vmem:[#allocation2] ss:$0 sm:$0xff]  ;;  %s272_s9 = sshll.u32 %s429_s6, 4  ;;  %s273_s9 = int_to_ptr.vmem [resolvable:$true] %s272_s9 }
  0x42   :  { %v160_v28 = vrot.slane %v155_v26, %v159_v25  ;;  %v164_v29 = vrot.slane %v155_v26, %v163_v27  ;;  %v229_v37 = vrot.slane %v224_v36, %v159_v25  ;;  %v233_v38 = vrot.slane %v224_v36, %v163_v27  ;;  %s390_s2 = scalar_lea.vmem %s273_s9, 32  ;;  %p395_p11 = scmp.lt.s32.totalorder %s273_s9, %s273_s9 }
  0x43   :  { %p391_p10 = scmp.ne.s32.totalorder %s273_s9, %s390_s2  ;;  %p396_p12 = scmp.lt.s32.totalorder %s390_s2, %s390_s2 }
  0x44   :  { %298 = vmatmul.mubr.msk.bf16.vlgmr.msra.gmra.mrb[0].mxu0 %vm94_vm1, %v70_v5 }
  0x45   :  { %p397_p13 = por %p396_p12, %p395_p11 }
  0x47   :  { %p398_p0 = pnand %p397_p13, %p391_p10 }
  0xaf   :  { %v144_v17 = vpop.permute.xlu0 %143 }
 0x117   :  { %v132_v7 = vpop.f32.mrb[0].mxu0 }
 0x118   :  { %v133_v8 = vadd.f32 %v282_v6, %v132_v7  ;;  %v299_v9 = vpop.f32.mrb[1].mxu0 }
 0x119   :  { %v135_v10 = vpop.f32.mrb[2].mxu0 }
 0x11a   :  { %v138_v11 = vmul.f32 0.5, %v133_v8  ;;  %v300_v12 = vpop.f32.mrb[3].mxu0 }
 0x11c   :  { %v139_v13 = vmul.f32 1.442695, %v138_v11 }
 0x11e   :  { %318 = vpow2.f32 %v139_v13 }
 0x128   :  { %v319_v18 = vpop.eup %318 }
 0x129   :  { %v146_v19 = vmul.f32 %v319_v18, %v144_v17 }
 0x12b   :  { %148 = vrot.lane.b32.xlu0 %v146_v19, %s427_s26 }
 0x19d   :  { %v149_v20 = vpop.permute.xlu0 %148 }
 0x19e   :  { %v151_v21 = vadd.f32 %v149_v20, %v133_v8 }
 0x1a0   :  { %v152_v22 = vpack.c.bf16 %v151_v21, %v151_v21  ;;  %253 = vst.msk [vmem:[#allocation9] sm:$0x3] %vm252_vm2, %v151_v21 }
 0x1a2   :  { %288 = vmatmul.mubr.msk.bf16.vlgmr.msra.gmra.mrb[0].mxu1 %vm177_vm3, %v152_v22 }
 0x275   :  { %v215_v30 = vpop.f32.mrb[0].mxu1 }
 0x276   :  { %v216_v31 = vadd.f32 %v215_v30, %v160_v28  ;;  %v217_v32 = vpop.f32.mrb[1].mxu1 }
 0x277   :  { %v218_v33 = vadd.f32 %v217_v32, %v164_v29  ;;  %v219_v34 = vpop.f32.mrb[2].mxu1 }
 0x278   :  { %320 = vtanh.f32 %v216_v31  ;;  %v220_v35 = vpop.f32.mrb[3].mxu1 }
 0x279   :  { %322 = vtanh.f32 %v218_v33 }
 0x282   :  { %v321_v39 = vpop.eup %320 }
 0x283   :  { %v323_v40 = vpop.eup %322  ;;  %v236_v41 = vmul.f32 %v321_v39, %v229_v37 }
 0x284   :  { %v237_v42 = vmul.f32 %v323_v40, %v233_v38 }
 0x285   :  { %v239_v43 = vsel %vm238_vm4, %v236_v41, 0.0 }
 0x286   :  { %v240_v44 = vsel %vm238_vm4, %v237_v42, 0.0 }
 0x287   :  { %v241_v45 = vadd.f32 %v240_v44, %v239_v43 }
 0x289   :  { %242 = vadd.xlane.f32.xlu1 %v241_v45 }
 0x29a   :  { %255 = vrot.lane.b32.xlu1 %v133_v8, %s425_s24 }
 0x316   :  { %v243_v47 = vpop.xlane.xlu1 %242 }
 0x317   :  { %v251_v48 = vadd.f32 %v289_v46, %v243_v47 }
 0x319   :  { %261 = vrot.lane.b32.xlu0 %v251_v48, %s428_s5 }
 0x31a   :  { %v256_v49 = vpop.permute.xlu1 %255 }
 0x31b   :  { %259 = vst.msk [vmem:[#allocation9] sm:$0x3] %vm258_vm5, %v256_v49 }
 0x38b   :  { %v262_v50 = vpop.permute.xlu0 %261 }
 0x38c   :  { %265 = vst.msk [vmem:[#allocation9] sm:$0x3] %vm264_vm6, %v262_v50 }
 0x38d   :  { %401 = shalt.err (!%p398_p0)
}
 0x38e   :  { %s402_s11 = scalar_lea.hbm %s551_s8, 32 }
 0x38f   :  { %p403_p1 = scmp.ne.s32.totalorder %s551_s8, %s402_s11  ;;  %p406_p2 = scmp.lt.u32.totalorder %s402_s11, %s551_s8 }
 0x391   :  { %p408_p3 = pnand %p406_p2, %p403_p1 }
 0x393   :  { %411 = shalt.err (!%p408_p3)
}
 0x394   :  { %275 = dma.vmem_to_hbm [thread:$0]  %s273_s9, 32, %s551_s8, [#allocation5]  }
 0x395   :  { %416 = dma.done.wait [#allocation5], 32  }
 0x396   :  { %417 = vsyncadd [#allocation5], 4294967264 }
 0x397   :  { %279 = vsyncpa [#allocation4], 1 }
 0x398   :  { %280 = vsyncpa [#allocation7], 1 }
 0x399   :  { %281 = vsyncpa [#allocation5], 1 }

</bundles_post_ra>
